<compile_context>
chip_gen: v7x
topology: tpu7x:2x2x1
jax: 0.10.0
libtpu: 0.0.40
codegen_flags: <defaults>
</compile_context>

<pallas_src>
import functools

import jax
import jax.numpy as jnp
import numpy as np
from jax.experimental import pallas as pl
from jax.experimental.pallas import tpu as pltpu

W_DTYPE = jnp.bfloat16           # MXU-friendly weight/activation dtype for matmuls
VMEM_LIMIT = 64 * 1024 * 1024    # explicit scoped-VMEM limit (fits all TPU gens)


# --------------------------------------------------------------------------- #
# Kernels
# --------------------------------------------------------------------------- #
def _in_proj_kernel(x_ref, w_in_ref, b_in_ref, w_ih0_ref, b0_ref, g0_ref):
    """gates0 = relu(x @ W_in + b_in) @ W_ih0 + b0   (parallel over row chunks)."""
    x0 = jnp.maximum(
        jnp.dot(x_ref[...], w_in_ref[...], preferred_element_type=jnp.float32)
        + b_in_ref[...],
        0.0,
    )
    g0_ref[...] = (
        jnp.dot(x0.astype(W_DTYPE), w_ih0_ref[...], preferred_element_type=jnp.float32)
        + b0_ref[...]
    )


def _out_proj_kernel(h_ref, w_out_ref, b_out_ref, o_ref):
    """out = h1_seq @ W_out + b_out   (parallel over row chunks)."""
    o_ref[...] = (
        jnp.dot(h_ref[...].astype(W_DTYPE), w_out_ref[...],
                preferred_element_type=jnp.float32)
        + b_out_ref[...]
    )


def _recurrent_kernel(g0_ref, w_hh0_ref, w1_ref, b1_ref, hseq_ref,
                      h0, c0, h1, c1, hcat, *, hp, chunk):
    """Two-layer LSTM recurrence over a chunk of `chunk` timesteps.

    g0_ref:   (chunk, Bs, 4*hp) precomputed layer-0 input gate contributions (f32)
    w_hh0:    (hp, 4*hp)        layer-0 recurrent weights (bf16)
    w1:       (2*hp, 4*hp)      stacked [W_ih1; W_hh1] (bf16)
    b1:       (1, 4*hp)         layer-1 summed bias (f32)
    hseq_ref: (chunk, Bs, hp)   emitted layer-1 hidden states (f32, lane-dense)
    """
    # Reset recurrent state at the first time-chunk of each batch shard
    # (torch defaults h0 = c0 = 0).
    @pl.when(pl.program_id(1) == 0)
    def _():
        h0[...] = jnp.zeros_like(h0)
        c0[...] = jnp.zeros_like(c0)
        h1[...] = jnp.zeros_like(h1)
        c1[...] = jnp.zeros_like(c1)

    def sigmoid(z):
        # one EUP op (tanh) instead of exp + divide
        return 0.5 * jnp.tanh(0.5 * z) + 0.5

    def gates_to_state(g, c_prev):
        i = sigmoid(g[:, 0 * hp:1 * hp])
        f = sigmoid(g[:, 1 * hp:2 * hp])
        gg = jnp.tanh(g[:, 2 * hp:3 * hp])
        o = sigmoid(g[:, 3 * hp:4 * hp])
        c_new = f * c_prev + i * gg
        h_new = o * jnp.tanh(c_new)
        return h_new, c_new

    def step(t, carry):
        # ---- layer 0: precomputed input gates + recurrent contribution ----
        g_l0 = g0_ref[t] + jnp.dot(h0[...].astype(W_DTYPE), w_hh0_ref[...],
                                   preferred_element_type=jnp.float32)
        h0_new, c0_new = gates_to_state(g_l0, c0[...])

        # ---- layer 1: fused [h_l0_new, h1_prev] @ [W_ih1; W_hh1] ----------
        hcat[:, 0:hp] = h0_new.astype(W_DTYPE)
        hcat[:, hp:2 * hp] = h1[...].astype(W_DTYPE)
        g_l1 = (jnp.dot(hcat[...], w1_ref[...], preferred_element_type=jnp.float32)
                + b1_ref[...])
        h1_new, c1_new = gates_to_state(g_l1, c1[...])

        h0[...] = h0_new
        c0[...] = c0_new
        h1[...] = h1_new
        c1[...] = c1_new
        hseq_ref[t] = h1_new
        return carry

    jax.lax.fori_loop(0, chunk, step, 0, unroll=True)


# --------------------------------------------------------------------------- #
# Padding helpers
# --------------------------------------------------------------------------- #
def _round_up(n, m):
    return ((n + m - 1) // m) * m


def _pad_to(a, target, axis):
    pad = target - a.shape[axis]
    if pad == 0:
        return a
    widths = [(0, 0)] * a.ndim
    widths[axis] = (0, pad)
    return jnp.pad(a, widths)


def _pad_gates(w, h, hp):
    """Pad the trailing 4*h gate axis to 4*hp, padding each [i,f,g,o] block."""
    lead = w.shape[:-1]
    w4 = w.reshape(lead + (4, h))
    w4 = _pad_to(w4, hp, axis=w4.ndim - 1)
    return w4.reshape(lead + (4 * hp,))


# --------------------------------------------------------------------------- #
# Wrapper
# --------------------------------------------------------------------------- #
def cudnn_lstm_model_forward(x, params, *, chunk_t=8, batch_shards=2):
    """x: (T, B, nx) float32 -> (T, B, ny) float32."""
    T, B, nx = x.shape
    H = params["w_in"].shape[1]
    ny = params["w_out"].shape[1]

    # ---- pad to TPU-friendly shapes --------------------------------------
    Hp = _round_up(H, 128)
    nxp = _round_up(nx, 128)
    Tp = _round_up(T, chunk_t)
    Bp = _round_up(B, 8 * batch_shards)
    Bs = Bp // batch_shards

    # ---- weights: pad + cast to bf16 (biases stay f32) --------------------
    w_in = _pad_to(_pad_to(params["w_in"], nxp, 0), Hp, 1).astype(W_DTYPE)      # (nxp, Hp)
    b_in = _pad_to(params["b_in"], Hp, 1).astype(jnp.float32)                   # (1, Hp)
    w_ih0 = _pad_gates(_pad_to(params["w_ih0"], Hp, 0), H, Hp).astype(W_DTYPE)  # (Hp, 4Hp)
    w_hh0 = _pad_gates(_pad_to(params["w_hh0"], Hp, 0), H, Hp).astype(W_DTYPE)  # (Hp, 4Hp)
    b0 = _pad_gates(params["b0"], H, Hp).astype(jnp.float32)                    # (1, 4Hp)
    w_ih1 = _pad_gates(_pad_to(params["w_ih1"], Hp, 0), H, Hp).astype(W_DTYPE)
    w_hh1 = _pad_gates(_pad_to(params["w_hh1"], Hp, 0), H, Hp).astype(W_DTYPE)
    w1 = jnp.concatenate([w_ih1, w_hh1], axis=0)                                # (2Hp, 4Hp)
    b1 = _pad_gates(params["b1"], H, Hp).astype(jnp.float32)                    # (1, 4Hp)
    w_out = _pad_to(params["w_out"], Hp, 0).astype(W_DTYPE)                     # (Hp, ny)
    b_out = params["b_out"].astype(jnp.float32)                                 # (1, ny)

    # ---- pad x and flatten for the (parallel) projection passes -----------
    xp = _pad_to(_pad_to(_pad_to(x, Tp, 0), Bp, 1), nxp, 2).astype(W_DTYPE)     # (Tp,Bp,nxp)
    rows = Tp * Bp
    rb = chunk_t * Bp                 # row block; rows % rb == 0 by construction
    x2 = xp.reshape(rows, nxp)

    # ---- 1) pre-pass: input projection + relu + layer-0 input gates -------
    g0 = pl.pallas_call(
        _in_proj_kernel,
        out_shape=jax.ShapeDtypeStruct((rows, 4 * Hp), jnp.float32),
        grid_spec=pltpu.PrefetchScalarGridSpec(
            num_scalar_prefetch=0,
            grid=(rows // rb,),
            in_specs=[
                pl.BlockSpec((rb, nxp), lambda r: (r, 0)),
                pl.BlockSpec((nxp, Hp), lambda r: (0, 0)),
                pl.BlockSpec((1, Hp), lambda r: (0, 0)),
                pl.BlockSpec((Hp, 4 * Hp), lambda r: (0, 0)),
                pl.BlockSpec((1, 4 * Hp), lambda r: (0, 0)),
            ],
            out_specs=pl.BlockSpec((rb, 4 * Hp), lambda r: (r, 0)),
        ),
        compiler_params=pltpu.CompilerParams(
            dimension_semantics=("parallel",),
            vmem_limit_bytes=VMEM_LIMIT),
    )(x2, w_in, b_in, w_ih0, b0)
    g0 = g0.reshape(Tp, Bp, 4 * Hp)

    # ---- 2) recurrent pass: chunked over time, batch sharded over cores ---
    h_seq = pl.pallas_call(
        functools.partial(_recurrent_kernel, hp=Hp, chunk=chunk_t),
        out_shape=jax.ShapeDtypeStruct((Tp, Bp, Hp), jnp.float32),
        grid_spec=pltpu.PrefetchScalarGridSpec(
            num_scalar_prefetch=0,
            grid=(batch_shards, Tp // chunk_t),
            in_specs=[
                pl.BlockSpec((chunk_t, Bs, 4 * Hp), lambda s, tc: (tc, s, 0)),
                pl.BlockSpec((Hp, 4 * Hp), lambda s, tc: (0, 0)),
                pl.BlockSpec((2 * Hp, 4 * Hp), lambda s, tc: (0, 0)),
                pl.BlockSpec((1, 4 * Hp), lambda s, tc: (0, 0)),
            ],
            out_specs=pl.BlockSpec((chunk_t, Bs, Hp), lambda s, tc: (tc, s, 0)),
            scratch_shapes=[
                pltpu.VMEM((Bs, Hp), jnp.float32),      # h layer 0
                pltpu.VMEM((Bs, Hp), jnp.float32),      # c layer 0
                pltpu.VMEM((Bs, Hp), jnp.float32),      # h layer 1
                pltpu.VMEM((Bs, Hp), jnp.float32),      # c layer 1
                pltpu.VMEM((Bs, 2 * Hp), W_DTYPE),      # fused [h_l0, h1] input
            ],
        ),
        compiler_params=pltpu.CompilerParams(
            dimension_semantics=("parallel", "arbitrary"),
            vmem_limit_bytes=VMEM_LIMIT),
    )(g0, w_hh0, w1, b1)

    # ---- 3) post-pass: output projection -----------------------------------
    h2 = h_seq.reshape(rows, Hp)
    out2 = pl.pallas_call(
        _out_proj_kernel,
        out_shape=jax.ShapeDtypeStruct((rows, ny), jnp.float32),
        grid_spec=pltpu.PrefetchScalarGridSpec(
            num_scalar_prefetch=0,
            grid=(rows // rb,),
            in_specs=[
                pl.BlockSpec((rb, Hp), lambda r: (r, 0)),
                pl.BlockSpec((Hp, ny), lambda r: (0, 0)),
                pl.BlockSpec((1, ny), lambda r: (0, 0)),
            ],
            out_specs=pl.BlockSpec((rb, ny), lambda r: (r, 0)),
        ),
        compiler_params=pltpu.CompilerParams(
            dimension_semantics=("parallel",),
            vmem_limit_bytes=VMEM_LIMIT),
    )(h2, w_out, b_out)

    return out2.reshape(Tp, Bp, ny)[:T, :B, :]


# --------------------------------------------------------------------------- #
# Parameters & reference
# --------------------------------------------------------------------------- #
def init_params(key, nx, ny, hidden):
    """Synthetic init mimicking PyTorch shapes.

    Linear weights are stored transposed (in, out).  LSTM ih/hh weights are
    (in, 4H) / (H, 4H) with PyTorch gate order [i, f, g, o]; the two LSTM
    biases (b_ih + b_hh) are pre-summed into one (1, 4H) vector per layer.
    """
    keys = jax.random.split(key, 12)
    u = lambda k, shape, bound: jax.random.uniform(
        k, shape, jnp.float32, minval=-bound, maxval=bound)

    b_lin_in = 1.0 / np.sqrt(nx)
    b_lstm = 1.0 / np.sqrt(hidden)
    b_lin_out = 1.0 / np.sqrt(hidden)

    return {
        "w_in": u(keys[0], (nx, hidden), b_lin_in),
        "b_in": u(keys[1], (1, hidden), b_lin_in),
        "w_ih0": u(keys[2], (hidden, 4 * hidden), b_lstm),
        "w_hh0": u(keys[3], (hidden, 4 * hidden), b_lstm),
        "b0": u(keys[4], (1, 4 * hidden), b_lstm) + u(keys[5], (1, 4 * hidden), b_lstm),
        "w_ih1": u(keys[6], (hidden, 4 * hidden), b_lstm),
        "w_hh1": u(keys[7], (hidden, 4 * hidden), b_lstm),
        "b1": u(keys[8], (1, 4 * hidden), b_lstm) + u(keys[9], (1, 4 * hidden), b_lstm),
        "w_out": u(keys[10], (hidden, ny), b_lin_out),
        "b_out": u(keys[11], (1, ny), b_lin_out),
    }


def reference_forward(x, params, hidden):
    """Pure-JAX reference mirroring the kernel's numerics (bf16 matmul inputs,
    f32 accumulation / gate math / state)."""
    H = hidden
    bf = W_DTYPE
    sig = lambda z: 0.5 * jnp.tanh(0.5 * z) + 0.5

    x0 = jnp.maximum(
        jnp.einsum("tbi,ih->tbh", x.astype(bf), params["w_in"].astype(bf),
                   preferred_element_type=jnp.float32) + params["b_in"], 0.0)
    g0_in = (jnp.einsum("tbh,hg->tbg", x0.astype(bf), params["w_ih0"].astype(bf),
                        preferred_element_type=jnp.float32) + params["b0"])

    w_hh0 = params["w_hh0"].astype(bf)
    w_ih1 = params["w_ih1"].astype(bf)
    w_hh1 = params["w_hh1"].astype(bf)
    b1 = params["b1"]

    def gates(g, c):
        i = sig(g[:, 0 * H:1 * H])
        f = sig(g[:, 1 * H:2 * H])
        gg = jnp.tanh(g[:, 2 * H:3 * H])
        o = sig(g[:, 3 * H:4 * H])
        c = f * c + i * gg
        return o * jnp.tanh(c), c

    B = x.shape[1]
    zeros = jnp.zeros((B, H), jnp.float32)

    def step(carry, g0_t):
        h0, c0, h1, c1 = carry
        gl0 = g0_t + jnp.dot(h0.astype(bf), w_hh0, preferred_element_type=jnp.float32)
        h0, c0 = gates(gl0, c0)
        gl1 = (jnp.dot(h0.astype(bf), w_ih1, preferred_element_type=jnp.float32)
               + jnp.dot(h1.astype(bf), w_hh1, preferred_element_type=jnp.float32) + b1)
        h1, c1 = gates(gl1, c1)
        return (h0, c0, h1, c1), h1

    _, hseq = jax.lax.scan(step, (zeros, zeros, zeros, zeros), g0_in)
    return (jnp.einsum("tbh,ho->tbo", hseq.astype(bf), params["w_out"].astype(bf),
                       preferred_element_type=jnp.float32) + params["b_out"])


if __name__ == "__main__":
    T, B, nx, hidden, ny = 16, 4, 16, 32, 4

    key = jax.random.PRNGKey(0)
    k_x, k_p = jax.random.split(key)
    x = jax.random.normal(k_x, (T, B, nx), dtype=jnp.float32)
    params = init_params(k_p, nx, ny, hidden)

    out = cudnn_lstm_model_forward(x, params, chunk_t=8, batch_shards=2)
    out = jax.block_until_ready(out)

    ref = jax.block_until_ready(reference_forward(x, params, hidden))
    np.testing.assert_allclose(np.asarray(out, dtype=np.float32),
                               np.asarray(ref, dtype=np.float32),
                               rtol=2e-3, atol=2e-3)

    print("KERNEL_OK")
</pallas_src>

<mosaic_0001>
module attributes {stable_mosaic.version = 11 : i64} {
  func.func @_in_proj_kernel(%arg0: i32, %arg1: memref<128x128xbf16, #tpu.memory_space<vmem>>, %arg2: memref<128x128xbf16, #tpu.memory_space<vmem>>, %arg3: memref<1x128xf32, #tpu.memory_space<vmem>>, %arg4: memref<128x512xbf16, #tpu.memory_space<vmem>>, %arg5: memref<1x512xf32, #tpu.memory_space<vmem>>, %arg6: memref<128x512xf32, #tpu.memory_space<vmem>>) attributes {dimension_semantics = [#tpu.dimension_semantics<parallel>], iteration_bounds = array<i64: 2>, scalar_prefetch = 0 : i64, scratch_operands = 0 : i64, tpu.core_type = #tpu.core_type<tc>, window_params = [{transform_indices = @transform_0, window_bounds = array<i64: 128, 128>}, {pipeline_mode = #tpu.pipeline_mode<synchronous>, transform_indices = @transform_1, window_bounds = array<i64: 128, 128>}, {pipeline_mode = #tpu.pipeline_mode<synchronous>, transform_indices = @transform_2, window_bounds = array<i64: 1, 128>}, {pipeline_mode = #tpu.pipeline_mode<synchronous>, transform_indices = @transform_3, window_bounds = array<i64: 128, 512>}, {pipeline_mode = #tpu.pipeline_mode<synchronous>, transform_indices = @transform_4, window_bounds = array<i64: 1, 512>}, {transform_indices = @transform_5, window_bounds = array<i64: 128, 512>}]} {
    %c0 = arith.constant 0 : index
    %c0_0 = arith.constant 0 : index
    %0 = vector.load %arg1[%c0, %c0_0] : memref<128x128xbf16, #tpu.memory_space<vmem>>, vector<128x128xbf16>
    %c0_1 = arith.constant 0 : index
    %c0_2 = arith.constant 0 : index
    %1 = vector.load %arg2[%c0_1, %c0_2] : memref<128x128xbf16, #tpu.memory_space<vmem>>, vector<128x128xbf16>
    %cst = arith.constant dense<0.000000e+00> : vector<128x128xf32>
    %2 = tpu.matmul %0, %1, %cst {dimension_numbers = #tpu.dot_dimension_numbers<[1], [0], [0], [1], [0, 0, 1, 1], [], []>} : vector<128x128xbf16>, vector<128x128xbf16>, vector<128x128xf32> -> vector<128x128xf32>
    %c0_3 = arith.constant 0 : index
    %c0_4 = arith.constant 0 : index
    %3 = vector.load %arg3[%c0_3, %c0_4] : memref<1x128xf32, #tpu.memory_space<vmem>>, vector<1x128xf32>
    %4 = vector.broadcast %3 : vector<1x128xf32> to vector<128x128xf32>
    %5 = arith.addf %2, %4 : vector<128x128xf32>
    %cst_5 = arith.constant 0.000000e+00 : f32
    %6 = vector.broadcast %cst_5 : f32 to vector<128x128xf32>
    %7 = arith.maximumf %5, %6 : vector<128x128xf32>
    %8 = arith.truncf %7 : vector<128x128xf32> to vector<128x128xbf16>
    %c0_6 = arith.constant 0 : index
    %c0_7 = arith.constant 0 : index
    %9 = vector.load %arg4[%c0_6, %c0_7] : memref<128x512xbf16, #tpu.memory_space<vmem>>, vector<128x512xbf16>
    %cst_8 = arith.constant dense<0.000000e+00> : vector<128x512xf32>
    %10 = tpu.matmul %8, %9, %cst_8 {dimension_numbers = #tpu.dot_dimension_numbers<[1], [0], [0], [1], [0, 0, 1, 1], [], []>} : vector<128x128xbf16>, vector<128x512xbf16>, vector<128x512xf32> -> vector<128x512xf32>
    %c0_9 = arith.constant 0 : index
    %c0_10 = arith.constant 0 : index
    %11 = vector.load %arg5[%c0_9, %c0_10] : memref<1x512xf32, #tpu.memory_space<vmem>>, vector<1x512xf32>
    %12 = vector.broadcast %11 : vector<1x512xf32> to vector<128x512xf32>
    %13 = arith.addf %10, %12 : vector<128x512xf32>
    %c0_11 = arith.constant 0 : index
    %c0_12 = arith.constant 0 : index
    %14 = vector.load %arg6[%c0_11, %c0_12] : memref<128x512xf32, #tpu.memory_space<vmem>>, vector<128x512xf32>
    tpu.vector_store %arg6[%c0_11, %c0_12], %13 {strides = array<i32>} : memref<128x512xf32, #tpu.memory_space<vmem>>, vector<128x512xf32>,
    return
  }
  func.func @transform_0(%arg0: i32) -> (i32, i32) {
    %c0_i32 = arith.constant 0 : i32
    %c0_i32_0 = arith.constant 0 : i32
    return %arg0, %c0_i32 : i32, i32
  }
  func.func @transform_1(%arg0: i32) -> (i32, i32) {
    %c0_i32 = arith.constant 0 : i32
    %c0_i32_0 = arith.constant 0 : i32
    %c0_i32_1 = arith.constant 0 : i32
    return %c0_i32, %c0_i32_0 : i32, i32
  }
  func.func @transform_2(%arg0: i32) -> (i32, i32) {
    %c0_i32 = arith.constant 0 : i32
    %c0_i32_0 = arith.constant 0 : i32
    %c0_i32_1 = arith.constant 0 : i32
    return %c0_i32, %c0_i32_0 : i32, i32
  }
  func.func @transform_3(%arg0: i32) -> (i32, i32) {
    %c0_i32 = arith.constant 0 : i32
    %c0_i32_0 = arith.constant 0 : i32
    %c0_i32_1 = arith.constant 0 : i32
    return %c0_i32, %c0_i32_0 : i32, i32
  }
  func.func @transform_4(%arg0: i32) -> (i32, i32) {
    %c0_i32 = arith.constant 0 : i32
    %c0_i32_0 = arith.constant 0 : i32
    %c0_i32_1 = arith.constant 0 : i32
    return %c0_i32, %c0_i32_0 : i32, i32
  }
  func.func @transform_5(%arg0: i32) -> (i32, i32) {
    %c0_i32 = arith.constant 0 : i32
    %c0_i32_0 = arith.constant 0 : i32
    return %arg0, %c0_i32 : i32, i32
  }
}

</mosaic_0001>

<bundles_post_ra>
// kernel: tpu_custom_call.1
= control target key start
LH: loop header
LB: loop body
LE: loop exit
PB: predicated region body
PF: predicated region fallthrough
CT: control target
= control target key end

     0   :  { %10 = vsyncpa [#allocation3], 0  ;;  %s2279_s0 = inlined_call_operand.hbm [shape: bf16[256,128], index: 0, kind: input, shape index: {}]   ;;  %s2280_s1 = inlined_call_operand.hbm [shape: bf16[128,128], index: 1, kind: input, shape index: {}]   ;;  %s2281_s2 = inlined_call_operand.hbm [shape: f32[1,128], index: 2, kind: input, shape index: {}]   ;;  %s2282_s3 = inlined_call_operand.hbm [shape: bf16[128,512], index: 3, kind: input, shape index: {}]   ;;  %s2283_s4 = inlined_call_operand.hbm [shape: f32[1,512], index: 4, kind: input, shape index: {}]   ;;  %s2284_s5 = inlined_call_operand.hbm [shape: f32[256,512], index: 5, kind: output, shape index: {}]  }
   0x1   :  { %12 = vsyncpa [#allocation3 + $0x1], 0 }
   0x2   :  { %13 = vsyncpa [#allocation6], 0 }
   0x3   :  { %14 = vsyncpa [#allocation9], 0 }
   0x4   :  { %15 = vsyncpa [#allocation4], 0 }
   0x5   :  { %17 = vsyncpa [#allocation4 + $0x1], 0  ;;  %s1744_s18 = smov 0   ;;  %s1746_s19 = smov 0  }
   0x6   :  { %s1748_s20 = smov 0   ;;  %s1750_s21 = smov 0  }
   0x7 LB: > { %s1765_s22 = sadd.s32 4294967295, %s1699_s21   ;;  %s1186_s23 = sadd.s32 4294967294, %s1699_s21   ;;  %s1699_s21 = sphi %s1750_s21, %s2309_s21   ;;  %s1695_s20 = sphi %s1748_s20, %s2308_s20   ;;  %s1691_s19 = sphi %s1746_s19, %s2307_s19   ;;  %s1687_s18 = sphi %s1744_s18, %s2306_s18  }
   0x8   : > { %p43_p0 = scmp.ne.s32.totalorder %s1691_s19, %s1687_s18  ;;  %p2285_p1 = scmp.eq.s32.totalorder %s1765_s22, 0 }
   0x9   : > { %p157_p3 = scmp.eq.s32.totalorder %s1186_s23, 1  ;;  %p1187_p5 = scmp.ge.s32.totalorder %s1699_s21, 1 }
   0xa   : > { %p1774_p4 = por %p2285_p1, %p43_p0  ;;  %p164_p7 = scmp.lt.s32.totalorder %s1699_s21, 3 }
   0xb   : > { %p1779_p6 = por %p157_p3, %p43_p0  ;;  %s1701_s27 = smov [#allocation5]  }
   0xc   : > { %s2289_s24 = scalar_select %p1774_p4, 1, 0 }
   0xd   : > { %s2290_s25 = scalar_select %p1779_p6, 1, 0 }
   0xe   : > { %p1784_p8 = pnand %p1187_p5, %p164_p7  ;;  %s176_s28 = sshll.u32 %s1701_s27, 4  ;;  %s1788_s28 = int_to_ptr.vmem [resolvable:$true] %s176_s28 }
   0xf   : > { %s1702_s30 = smov [#allocation8]   ;;  %s1483_s9 = scalar_lea.hbm %s2280_s1, 1024 }
  0x10   : > { %s2291_s26 = scalar_select %p1784_p8, 1, 0 }
  0x11   : > { %p1345_p9 = pneg %p1784_p8  ;;  %s200_s6 = sshll.u32 %s1702_s30, 4  ;;  %s1799_s6 = int_to_ptr.vmem [resolvable:$true] %s200_s6 }
  0x12   : > { %p1484_p12 = scmp.ne.s32.totalorder %s2280_s1, %s1483_s9  ;;  %p1490_p5 = scmp.lt.u32.totalorder %s1483_s9, %s2280_s1 }
  0x13   : > { %p1795_p11 = pnand %p1345_p9, %p2285_p1 }
  0x15   : > { %p1809_p13 = pneg %p1795_p11 }
  0x17   : > { %p1486_p0 = pnand %p1809_p13, %p1484_p12 }
  0x19   : > { %p1487_p3 = pneg %p1486_p0 }
  0x1b   : > { %p1492_p7 = pnand %p1490_p5, %p1487_p3 }
  0x1d   : > { %1495 = shalt.err (!%p1492_p7)
}
  0x1e   : > { %s1496_s15 = scalar_lea.vmem %s1788_s28, 1024  ;;  %p1504_p2 = scmp.lt.s32.totalorder %s1788_s28, %s1788_s28 }
  0x1f   : > { %p1497_p9 = scmp.ne.s32.totalorder %s1788_s28, %s1496_s15  ;;  %p1505_p6 = scmp.lt.s32.totalorder %s1496_s15, %s1496_s15 }
  0x21   : > { %p1499_p10 = pnand %p1497_p9, %p1809_p13  ;;  %p1506_p12 = por %p1505_p6, %p1504_p2 }
  0x23   : > { %p1500_p1 = pneg %p1499_p10 }
  0x25   : > { %p1507_p0 = pnand %p1506_p12, %p1500_p1 }
  0x27   : > { %1510 = shalt.err (!%p1507_p0)
}
  0x28   : > { %s2286_s16 = smov 64   ;;  %s1704_s17 = smov 4  }
  0x29   : > { %1348 = dma.hbm_to_vmem [thread:$0]  (!%p1795_p11), %s2280_s1, 1024, %s1788_s28, [#allocation6], %s2286_s16, %s2286_s16, %s1704_s17  }
  0x2a   : > { %s1511_s8 = scalar_lea.hbm %s2282_s3, 4096 }
  0x2b   : > { %p1512_p1 = scmp.ne.s32.totalorder %s2282_s3, %s1511_s8  ;;  %p1518_p10 = scmp.lt.u32.totalorder %s1511_s8, %s2282_s3 }
  0x2d   : > { %p1514_p2 = pnand %p1512_p1, %p1809_p13 }
  0x2f   : > { %p1515_p6 = pneg %p1514_p2 }
  0x31   : > { %p1520_p3 = pnand %p1518_p10, %p1515_p6 }
  0x33   : > { %1523 = shalt.err (!%p1520_p3)
}
  0x34   : > { %s1524_s28 = scalar_lea.vmem %s1799_s6, 4096  ;;  %p1532_p12 = scmp.lt.s32.totalorder %s1799_s6, %s1799_s6 }
  0x35   : > { %p1525_p5 = scmp.ne.s32.totalorder %s1799_s6, %s1524_s28  ;;  %p1533_p0 = scmp.lt.s32.totalorder %s1524_s28, %s1524_s28 }
  0x37   : > { %p1527_p7 = pnand %p1525_p5, %p1809_p13  ;;  %p1534_p1 = por %p1533_p0, %p1532_p12 }
  0x39   : > { %p1528_p9 = pneg %p1527_p7 }
  0x3b   : > { %p1535_p2 = pnand %p1534_p1, %p1528_p9 }
  0x3d   : > { %1538 = shalt.err (!%p1535_p2)
}
  0x3e   : > { %s1705_s14 = smov 256   ;;  %s1706_s15 = smov 16  }
  0x3f   : > { %1354 = dma.hbm_to_vmem [thread:$0]  (!%p1795_p11), %s2282_s3, 4096, %s1799_s6, [#allocation9], %s1705_s14, %s1705_s14, %s1706_s15  }
  0x40   : > { %s1707_s30 = smov [#allocation7]   ;;  %s1708_s8 = smov [#allocation10]  }
  0x41   : > { %s190_s7 = sshll.u32 %s1707_s30, 4  ;;  %s214_s9 = sshll.u32 %s1708_s8, 4  ;;  %s191_s7 = int_to_ptr.vmem [resolvable:$true] %s190_s7  ;;  %s1856_s9 = int_to_ptr.vmem [resolvable:$true] %s214_s9 }
  0x42   : > { %s1539_s13 = scalar_lea.hbm %s2281_s2, 16 }
  0x43   : > { %p1540_p6 = scmp.ne.s32.totalorder %s2281_s2, %s1539_s13  ;;  %p1546_p5 = scmp.lt.u32.totalorder %s1539_s13, %s2281_s2 }
  0x45   : > { %p1542_p10 = pnand %p1540_p6, %p1809_p13 }
  0x47   : > { %p1543_p3 = pneg %p1542_p10 }
  0x49   : > { %p1548_p7 = pnand %p1546_p5, %p1543_p3 }
  0x4b   : > { %1551 = shalt.err (!%p1548_p7)
}
  0x4c   : > { %s1552_s14 = scalar_lea.vmem %s191_s7, 16  ;;  %s1559_s15 = scalar_lea.vmem %s191_s7, 32 }
  0x4d   : > { %p1553_p9 = scmp.ne.s32.totalorder %s191_s7, %s1552_s14  ;;  %p1560_p1 = scmp.lt.s32.totalorder %s191_s7, %s191_s7 }
  0x4e   : > { %p1561_p2 = scmp.lt.s32.totalorder %s1559_s15, %s1552_s14 }
  0x4f   : > { %p1555_p12 = pnand %p1553_p9, %p1809_p13 }
  0x50   : > { %p1562_p4 = por %p1561_p2, %p1560_p1 }
  0x51   : > { %p1556_p0 = pneg %p1555_p12 }
  0x53   : > { %p1563_p8 = pnand %p1562_p4, %p1556_p0 }
  0x55   : > { %1566 = shalt.err (!%p1563_p8)
}
  0x56   : > { %1351 = dma.hbm_to_vmem [thread:$0]  (!%p1795_p11), %s2281_s2, 16, %s191_s7, [#allocation6]  }
  0x57   : > { %s1567_s10 = scalar_lea.hbm %s2283_s4, 64 }
  0x58   : > { %p1568_p6 = scmp.ne.s32.totalorder %s2283_s4, %s1567_s10  ;;  %p1574_p4 = scmp.lt.u32.totalorder %s1567_s10, %s2283_s4 }
  0x5a   : > { %p1570_p10 = pnand %p1568_p6, %p1809_p13 }
  0x5c   : > { %p1571_p3 = pneg %p1570_p10 }
  0x5e   : > { %p1576_p8 = pnand %p1574_p4, %p1571_p3 }
  0x60   : > { %1579 = shalt.err (!%p1576_p8)
}
  0x61   : > { %s1580_s7 = scalar_lea.vmem %s1856_s9, 64  ;;  %p1588_p12 = scmp.lt.s32.totalorder %s1856_s9, %s1856_s9 }
  0x62   : > { %p1581_p5 = scmp.ne.s32.totalorder %s1856_s9, %s1580_s7  ;;  %p1589_p0 = scmp.lt.s32.totalorder %s1580_s7, %s1580_s7 }
  0x64   : > { %p1583_p7 = pnand %p1581_p5, %p1809_p13  ;;  %p1590_p1 = por %p1589_p0, %p1588_p12 }
  0x66   : > { %p1584_p9 = pneg %p1583_p7 }
  0x68   : > { %p1591_p2 = pnand %p1590_p1, %p1584_p9 }
  0x6a   : > { %1594 = shalt.err (!%p1591_p2)
}
  0x6b   : > { %1357 = dma.hbm_to_vmem [thread:$0]  (!%p1795_p11), %s2283_s4, 64, %s1856_s9, [#allocation9]  }
  0x6c   : > { %s1900_s12 = sadd.s32 1, %s1699_s21   ;;  %s30_s15 = sadd.s32 1, %s1695_s20 }
  0x6d   : > { %s27_s29 = ssub.s32 %s1699_s21, %s1900_s12  ;;  %p37_p6 = scmp.ne.s32.totalorder %s1695_s20, %s1691_s19 }
  0x6e   : > { %p28_p13 = scmp.eq.s32.totalorder %s27_s29, 0  ;;  %p38_p10 = scmp.eq.s32.totalorder %s1699_s21, 0 }
  0x6f   : > { %p2294_p4 = scmp.eq.s32.totalorder %s1765_s22, 1  ;;  %p1370_p5 = scmp.lt.s32.totalorder %s1699_s21, 2 }
  0x70   : > { %s1909_s16 = scalar_select %p28_p13, %s1695_s20, %s30_s15  }
  0x71   : > { %p39_p3 = por %p38_p10, %p37_p6  ;;  %p1913_p8 = por %p2294_p4, %p37_p6 }
  0x72   : > { %s225_s30 = sand.u32 1, %s1695_s20   ;;  %s1258_s9 = sshll.u32 %s1699_s21, 10 }
  0x73   : > { %s1193_s8 = sshll.u32 %s225_s30, 6  ;;  %s1923_s13 = scalar_lea.hbm %s2279_s0, %s1258_s9 }
  0x74   : > { %s229_s28 = scalar_lea.vmem [#allocation2], %s1193_s8  ;;  %p1927_p11 = pnand %p1370_p5, %p39_p3 }
  0x75   : > { %s236_s23 = sshll.u32 %s229_s28, 4  ;;  %s1931_s6 = scalar_lea.sflag [#allocation3], %s225_s30  ;;  %s1925_s23 = int_to_ptr.vmem [resolvable:$true] %s236_s23 }
  0x76   : > { %s1595_s14 = scalar_lea.hbm %s1923_s13, 1024  ;;  %p1597_p9 = pneg %p1927_p11 }
  0x77   : > { %p1596_p7 = scmp.ne.s32.totalorder %s1923_s13, %s1595_s14  ;;  %s1600_s8 = scalar_lea.hbm %s2279_s0, 2048 }
  0x78   : > { %p1601_p1 = scmp.lt.u32.totalorder %s1923_s13, %s2279_s0  ;;  %p1602_p2 = scmp.lt.u32.totalorder %s1600_s8, %s1595_s14 }
  0x79   : > { %p1598_p12 = pnand %p1597_p9, %p1596_p7  ;;  %p1604_p6 = scmp.lt.u32.totalorder %s1595_s14, %s1923_s13 }
  0x7a   : > { %p1603_p13 = por %p1602_p2, %p1601_p1 }
  0x7b   : > { %p1599_p0 = pneg %p1598_p12 }
  0x7c   : > { %p1605_p10 = por %p1604_p6, %p1603_p13 }
  0x7e   : > { %p1606_p3 = pnand %p1605_p10, %p1599_p0 }
  0x80   : > { %1609 = shalt.err (!%p1606_p3)
}
  0x81   : > { %s1610_s30 = scalar_lea.vmem %s1925_s23, 1024  ;;  %s1709_s11 = smov [#allocation2]  }
  0x82   : > { %p1611_p4 = scmp.ne.s32.totalorder %s1925_s23, %s1610_s30  ;;  %s1615_s28 = sshll.u32 %s1709_s11, 4  ;;  %s1616_s28 = int_to_ptr.vmem [resolvable:$false] %s1615_s28 }
  0x83   : > { %s1617_s29 = scalar_lea.vmem %s1616_s28, 2048  ;;  %p1618_p12 = scmp.lt.s32.totalorder %s1925_s23, %s1616_s28 }
  0x84   : > { %p1613_p5 = pnand %p1611_p4, %p1597_p9  ;;  %p1619_p1 = scmp.lt.s32.totalorder %s1617_s29, %s1610_s30 }
  0x86   : > { %p1614_p7 = pneg %p1613_p5  ;;  %p1620_p2 = por %p1619_p1, %p1618_p12 }
  0x88   : > { %p1621_p13 = pnand %p1620_p2, %p1614_p7 }
  0x8a   : > { %1624 = shalt.err (!%p1621_p13)
}
  0x8b   : > { %s2297_s14 = smov 64   ;;  %p2298_p9 = scmp.ne.s32.totalorder %s2291_s26, 0 }
  0x8c   : > { %1361 = dma.hbm_to_vmem [thread:$0]  (!%p1927_p11), %s1923_s13, 1024, %s1925_s23, %s1931_s6, %s2297_s14, %s2297_s14, %s1704_s17  }
  0x8d   : > { %248 = sbr.rel (%p2298_p9) target bundleno = 714 (0x2ca), region = 40  ;;  %s1965_s15 = sand.u32 (!%p2298_p9), 1, %s1691_s19  }
  0x8e   : > { %s1197_s8 = sshll.u32 (!%p2298_p9), %s1965_s15, 6  ;;  %s251_s9 = scalar_lea.sflag (!%p2298_p9), [#allocation3], %s1965_s15 }
  0x8f   : > { %s1969_s10 = scalar_lea.vmem (!%p2298_p9), [#allocation2], %s1197_s8  ;;  %p2299_p0 = scmp.ne.s32.totalorder (!%p2298_p9), %s2289_s24, 0 }
  0x94   : > { %1670 = dma.done.wait (%p2299_p0), %s251_s9, 1024  }
  0x95   : > { %1672 = vsyncadd (%p2299_p0), %s251_s9, 4294966272  ;;  %p2300_p11 = scmp.eq.s32.totalorder %s1765_s22, 0 }
  0x97   : > { %1674 = dma.done.wait (%p2300_p11), [#allocation6], 1040   ;;  %p2301_p6 = pmov %p2300_p11 }
  0x99   : > { %1676 = vsyncadd (%p2301_p6), [#allocation6], 4294966256  ;;  %p2302_p10 = pmov %p2301_p6 }
  0x9a   : > { %p2303_p3 = pmov %p2301_p6 }
  0x9b   : > { %1678 = dma.done.wait (%p2302_p10), [#allocation9], 4160  }
  0x9c   : > { %1680 = vsyncadd (%p2303_p3), [#allocation9], 4294963136  ;;  %v1419_v0 = vld [vmem:[#allocation5] sm:$0xff]   ;;  %v1420_v1 = vld [vmem:[#allocation5 + $0x8] sm:$0xff]   ;;  %v1710_v48 = vmov 0   ;;  %s1202_s24 = sshll.u32 %s1965_s15, 9 }
  0x9d   : > { %1277 = vmatprep.subr.bf16.mxu0 %v1419_v0  ;;  %v1421_v2 = vld [vmem:[#allocation5 + $0x10] sm:$0xff]   ;;  %v1422_v3 = vld [vmem:[#allocation5 + $0x18] sm:$0xff]   ;;  %v1427_v4 = vld [vmem:[%s1969_s10] sm:$0xff]   ;;  %802 = vmatprep.mubr.bf16.mxu1 %v1710_v48  ;;  %s2102_s26 = scalar_lea.vmem [#allocation11], %s1202_s24  ;;  %s1260_s17 = sshll.u32 %s1765_s22, 13 }
  0x9e   : > { %1278 = vmatpush3.bf16.msra.mxu0 %v1419_v0  ;;  %1293 = vmatprep.mubr.bf16.mxu0 %v1427_v4  ;;  %v1423_v5 = vld [vmem:[#allocation5 + $0x20] sm:$0xff]   ;;  %v1424_v6 = vld [vmem:[#allocation5 + $0x28] sm:$0xff]   ;;  %v1425_v11 = vld [vmem:[#allocation5 + $0x30] sm:$0xff]   ;;  %s1075_s13 = sshll.u32 %s2102_s26, 4  ;;  %s2229_s6 = scalar_lea.hbm %s2284_s5, %s1260_s17  ;;  %s2231_s13 = int_to_ptr.vmem [resolvable:$true] %s1075_s13 }
  0x9f   : > { %1279 = vmatprep.subr.bf16.mxu0 %v1420_v1  ;;  %v1435_v7 = vld [vmem:[#allocation8 + $0x4] ss:$16 sps:$4 sm:$0xff]   ;;  %v1437_v8 = vld [vmem:[#allocation8] ss:$16 sps:$4 sm:$0xff]   ;;  %v1984_v16 = vld [vmem:[#allocation8 + $0xc] ss:$16 sps:$4 sm:$0xff]  }
  0xa0   : > { %770 = vmatprep.subr.bf16.mxu1 %v1435_v7  ;;  %v1441_v9 = vld [vmem:[#allocation8 + $0x24] ss:$16 sps:$4 sm:$0xff]   ;;  %v1443_v10 = vld [vmem:[#allocation8 + $0x20] ss:$16 sps:$4 sm:$0xff]   ;;  %v1988_v21 = vld [vmem:[#allocation8 + $0x8] ss:$16 sps:$4 sm:$0xff]  }
  0xa1   : > { %771 = vmatpush1.bf16.msra.mxu1 %v1437_v8  ;;  %v1447_v12 = vld [vmem:[#allocation8 + $0x44] ss:$16 sps:$4 sm:$0xff]   ;;  %v1449_v14 = vld [vmem:[#allocation8 + $0x40] ss:$16 sps:$4 sm:$0xff]   ;;  %v1990_v22 = vld [vmem:[#allocation8 + $0x2c] ss:$16 sps:$4 sm:$0xff]  }
  0xa2   : > { %1280 = vmatpush3.bf16.msra.mxu0 %v1420_v1  ;;  %772 = vmatprep.subr.bf16.mxu1 %v1441_v9  ;;  %v1426_v13 = vld [vmem:[#allocation5 + $0x38] sm:$0xff]   ;;  %v1455_v17 = vld [vmem:[#allocation8 + $0x60] ss:$16 sps:$4 sm:$0xff]   ;;  %v1428_v18 = vld [vmem:[%s1969_s10 + $0x8] sm:$0xff]   ;;  %s1061_s22 = scalar_lea.sflag [#allocation4], %s1965_s15  ;;  %s1625_s30 = scalar_lea.vmem %s2231_s13, 8192 }
  0xa3   : > { %1281 = vmatprep.subr.bf16.mxu0 %v1421_v2  ;;  %v1453_v15 = vld [vmem:[#allocation8 + $0x64] ss:$16 sps:$4 sm:$0xff]   ;;  %v1461_v23 = vld [vmem:[#allocation8 + $0x80] ss:$16 sps:$4 sm:$0xff]   ;;  %v1994_v25 = vld [vmem:[#allocation8 + $0x28] ss:$16 sps:$4 sm:$0xff]   ;;  %p1626_p4 = scmp.ne.s32.totalorder %s2231_s13, %s1625_s30 }
  0xa4   : > { %v1459_v19 = vld [vmem:[#allocation8 + $0x84] ss:$16 sps:$4 sm:$0xff]   ;;  %v1997_v26 = vld [vmem:[#allocation8 + $0x4c] ss:$16 sps:$4 sm:$0xff]   ;;  %v1467_v27 = vld [vmem:[#allocation8 + $0xa0] ss:$16 sps:$4 sm:$0xff]  }
  0xa5   : > { %773 = vmatpush1.bf16.msra.mxu1 %v1443_v10  ;;  %v1429_v20 = vld [vmem:[%s1969_s10 + $0x10] sm:$0xff]   ;;  %v1430_v28 = vld [vmem:[%s1969_s10 + $0x18] sm:$0xff]   ;;  %v1431_v29 = vld [vmem:[%s1969_s10 + $0x20] sm:$0xff]   ;;  %p1627_p5 = pnand %p1626_p4, %p1913_p8  ;;  %s1711_s11 = smov [#allocation11]  }
  0xa6   : > { %1282 = vmatpush3.bf16.msra.mxu0 %v1421_v2  ;;  %774 = vmatprep.subr.bf16.mxu1 %v1447_v12  ;;  %v1465_v24 = vld [vmem:[#allocation8 + $0xa4] ss:$16 sps:$4 sm:$0xff]   ;;  %v2002_v30 = vld [vmem:[#allocation8 + $0x48] ss:$16 sps:$4 sm:$0xff]   ;;  %v2005_v31 = vld [vmem:[#allocation8 + $0x6c] ss:$16 sps:$4 sm:$0xff]  }
  0xa7   : > { %1283 = vmatprep.subr.bf16.mxu0 %v1422_v3  ;;  %v2008_v32 = vld [vmem:[#allocation8 + $0x68] ss:$16 sps:$4 sm:$0xff]   ;;  %v2011_v33 = vld [vmem:[#allocation8 + $0x8c] ss:$16 sps:$4 sm:$0xff]   ;;  %v1471_v40 = vld [vmem:[#allocation8 + $0xc4] ss:$16 sps:$4 sm:$0xff]   ;;  %p1628_p7 = pneg %p1627_p5 }
  0xa8   : > { %v1432_v34 = vld [vmem:[%s1969_s10 + $0x28] sm:$0xff]   ;;  %v1433_v35 = vld [vmem:[%s1969_s10 + $0x30] sm:$0xff]   ;;  %v1434_v39 = vld [vmem:[%s1969_s10 + $0x38] sm:$0xff]   ;;  %s1629_s28 = sshll.u32 %s1711_s11, 4  ;;  %s1630_s28 = int_to_ptr.vmem [resolvable:$false] %s1629_s28 }
  0xa9   : > { %775 = vmatpush1.bf16.msra.mxu1 %v1449_v14  ;;  %v2016_v36 = vld [vmem:[#allocation8 + $0x88] ss:$16 sps:$4 sm:$0xff]   ;;  %v2019_v37 = vld [vmem:[#allocation8 + $0xac] ss:$16 sps:$4 sm:$0xff]   ;;  %v1473_v42 = vld [vmem:[#allocation8 + $0xc0] ss:$16 sps:$4 sm:$0xff]   ;;  %p1632_p12 = scmp.lt.s32.totalorder %s2231_s13, %s1630_s28 }
  0xaa   : > { %1284 = vmatpush3.bf16.msra.mxu0 %v1422_v3  ;;  %776 = vmatprep.subr.bf16.mxu1 %v1453_v15  ;;  %v2022_v38 = vld [vmem:[#allocation8 + $0xa8] ss:$16 sps:$4 sm:$0xff]   ;;  %v2027_v41 = vld [vmem:[#allocation8 + $0xcc] ss:$16 sps:$4 sm:$0xff]   ;;  %v1477_v44 = vld [vmem:[#allocation8 + $0xe4] ss:$16 sps:$4 sm:$0xff]  }
  0xab   : > { %1285 = vmatprep.subr.bf16.mxu0 %v1423_v5  ;;  %v2029_v43 = vld [vmem:[#allocation8 + $0xc8] ss:$16 sps:$4 sm:$0xff]   ;;  %v2033_v45 = vld [vmem:[#allocation8 + $0xec] ss:$16 sps:$4 sm:$0xff]   ;;  %v1479_v46 = vld [vmem:[#allocation8 + $0xe0] ss:$16 sps:$4 sm:$0xff]  }
  0xac   : > { %v2035_v47 = vld [vmem:[#allocation8 + $0xe8] ss:$16 sps:$4 sm:$0xff]   ;;  %v2042_v49 = vld [vmem:[#allocation7] ss:$0 sm:$0xff]  ;;  %s1631_s29 = scalar_lea.vmem %s1630_s28, 16384 }
  0xad   : > { %777 = vmatpush1.bf16.msra.mxu1 %v1455_v17  ;;  %p1633_p1 = scmp.lt.s32.totalorder %s1631_s29, %s1625_s30 }
  0xae   : > { %1286 = vmatpush3.bf16.msra.mxu0 %v1423_v5  ;;  %778 = vmatprep.subr.bf16.mxu1 %v1459_v19 }
  0xaf   : > { %1287 = vmatprep.subr.bf16.mxu0 %v1424_v6  ;;  %p1634_p2 = por %p1633_p1, %p1632_p12 }
  0xb1   : > { %779 = vmatpush1.bf16.msra.mxu1 %v1461_v23  ;;  %p1635_p13 = pnand %p1634_p2, %p1628_p7 }
  0xb2   : > { %1288 = vmatpush3.bf16.msra.mxu0 %v1424_v6  ;;  %780 = vmatprep.subr.bf16.mxu1 %v1465_v24 }
  0xb3   : > { %1289 = vmatprep.subr.bf16.mxu0 %v1425_v11 }
  0xb5   : > { %781 = vmatpush1.bf16.msra.mxu1 %v1467_v27 }
  0xb6   : > { %1290 = vmatpush3.bf16.msra.mxu0 %v1425_v11  ;;  %782 = vmatprep.subr.bf16.mxu1 %v1471_v40 }
  0xb7   : > { %1291 = vmatprep.subr.bf16.mxu0 %v1426_v13 }
  0xb9   : > { %783 = vmatpush1.bf16.msra.mxu1 %v1473_v42 }
  0xba   : > { %1292 = vmatpush3.bf16.msra.mxu0 %v1426_v13  ;;  %784 = vmatprep.subr.bf16.mxu1 %v1477_v44 }
  0xbb   : > { %883 = vmatprep.subr.bf16.mxu0 %v1984_v16 }
  0xbd   : > { %1294 = vmatmul.mubr.bf16.vlgmr.msra.gmra.mrb[0].mxu0 %v1428_v18  ;;  %785 = vmatpush1.bf16.msra.mxu1 %v1479_v46 }
  0xbe   : > { %1297 = vmatprep.mubr.bf16.mxu0 %v1429_v20  ;;  %884 = vmatpush1.bf16.msra.mxu0 %v1988_v21 }
  0xbf   : > { %885 = vmatprep.subr.bf16.mxu0 %v1990_v22  ;;  %1309 = vmatprep.subr.bf16.mxu1 %v1984_v16 }
  0xc2   : > { %886 = vmatpush1.bf16.msra.mxu0 %v1994_v25 }
  0xc3   : > { %887 = vmatprep.subr.bf16.mxu0 %v1997_v26 }
  0xc5   : > { %1298 = vmatmul.mubr.bf16.gmra.mrb[4].mxu0 %v1430_v28 }
  0xc6   : > { %1301 = vmatprep.mubr.bf16.mxu0 %v1431_v29  ;;  %888 = vmatpush1.bf16.msra.mxu0 %v2002_v30 }
  0xc7   : > { %889 = vmatprep.subr.bf16.mxu0 %v2005_v31 }
  0xca   : > { %890 = vmatpush1.bf16.msra.mxu0 %v2008_v32 }
  0xcb   : > { %891 = vmatprep.subr.bf16.mxu0 %v2011_v33 }
  0xcd   : > { %1302 = vmatmul.mubr.bf16.gmra.mrb[8].mxu0 %v1432_v34 }
  0xce   : > { %1305 = vmatprep.mubr.bf16.mxu0 %v1433_v35  ;;  %892 = vmatpush1.bf16.msra.mxu0 %v2016_v36 }
  0xcf   : > { %893 = vmatprep.subr.bf16.mxu0 %v2019_v37 }
  0xd2   : > { %894 = vmatpush1.bf16.msra.mxu0 %v2022_v38 }
  0xd3   : > { %895 = vmatprep.subr.bf16.mxu0 %v2027_v41 }
  0xd5   : > { %1306 = vmatmul.mubr.bf16.gmra.mrb[12].mxu0 %v1434_v39 }
  0xd6   : > { %896 = vmatpush1.bf16.msra.mxu0 %v2029_v43  ;;  %915 = vmatprep.mubr.bf16.mxu0 %v1710_v48 }
  0xd7   : > { %897 = vmatprep.subr.bf16.mxu0 %v2033_v45 }
  0xda   : > { %898 = vmatpush1.bf16.msra.mxu0 %v2035_v47 }
 0x190   : > { %v1295_v50 = vpop.f32.mrb[0].mxu0 }
 0x191   : > { %v478_v51 = vadd.f32 %v1295_v50, %v2042_v49  ;;  %v469_v52 = vpop.f32.mrb[1].mxu0 }
 0x192   : > { %v470_v53 = vadd.f32 %v2042_v49, %v469_v52  ;;  %v1296_v54 = vpop.f32.mrb[2].mxu0 }
 0x193   : > { %v481_v55 = vadd.f32 %v1296_v54, %v2042_v49  ;;  %v472_v56 = vpop.f32.mrb[3].mxu0  ;;  %v534_v58 = vmax.f32 %v478_v51, 0.0 }
 0x194   : > { %v473_v57 = vadd.f32 %v2042_v49, %v472_v56  ;;  %v532_v60 = vmax.f32 %v470_v53, 0.0 }
 0x195   : > { %v535_v59 = vmax.f32 %v481_v55, 0.0 }
 0x196   : > { %v533_v61 = vmax.f32 %v473_v57, 0.0 }
 0x197   : > { %v549_v62 = vpack.c.bf16 %v535_v59, %v534_v58 }
 0x198   : > { %v548_v63 = vpack.c.bf16 %v533_v61, %v532_v60  ;;  %v1299_v0 = vpop.f32.mrb[4].mxu0 }
 0x199   : > { %v494_v1 = vadd.f32 %v1299_v0, %v2042_v49  ;;  %v485_v2 = vpop.f32.mrb[5].mxu0 }
 0x19a   : > { %803 = vmatmul.mubr.bf16.vlgmr.msra.gmra.mrb[0].mxu1 %v548_v63  ;;  %916 = vmatmul.mubr.bf16.vlgmr.msra.gmra.mrb[16].mxu0 %v548_v63  ;;  %v486_v3 = vadd.f32 %v2042_v49, %v485_v2  ;;  %v1300_v4 = vpop.f32.mrb[6].mxu0 }
 0x19b   : > { %1317 = vmatpush1.bf16.msra.mxu1 %v1988_v21  ;;  %v538_v5 = vmax.f32 %v494_v1, 0.0  ;;  %v497_v6 = vadd.f32 %v1300_v4, %v2042_v49  ;;  %v488_v7 = vpop.f32.mrb[7].mxu0  ;;  %812 = vmatprep.mubr.bf16.mxu1 %v1710_v48 }
 0x19c   : > { %v536_v8 = vmax.f32 %v486_v3, 0.0  ;;  %v489_v9 = vadd.f32 %v2042_v49, %v488_v7  ;;  %1310 = vmatprep.subr.bf16.mxu1 %v1990_v22  ;;  %925 = vmatprep.mubr.bf16.mxu0 %v1710_v48 }
 0x19d   : > { %v539_v10 = vmax.f32 %v497_v6, 0.0 }
 0x19e   : > { %v537_v11 = vmax.f32 %v489_v9, 0.0 }
 0x19f   : > { %v551_v12 = vpack.c.bf16 %v539_v10, %v538_v5  ;;  %1318 = vmatpush1.bf16.msra.mxu1 %v1994_v25 }
 0x1a0   : > { %v550_v13 = vpack.c.bf16 %v537_v11, %v536_v8  ;;  %1311 = vmatprep.subr.bf16.mxu1 %v1997_v26  ;;  %v1303_v14 = vpop.f32.mrb[8].mxu0 }
 0x1a1   : > { %v510_v15 = vadd.f32 %v1303_v14, %v2042_v49  ;;  %v501_v16 = vpop.f32.mrb[9].mxu0 }
 0x1a2   : > { %813 = vmatmul.mubr.bf16.gmra.mrb[4].mxu1 %v549_v62  ;;  %926 = vmatmul.mubr.bf16.gmra.mrb[20].mxu0 %v549_v62  ;;  %v502_v17 = vadd.f32 %v2042_v49, %v501_v16  ;;  %v1304_v18 = vpop.f32.mrb[10].mxu0 }
 0x1a3   : > { %822 = vmatprep.mubr.bf16.mxu1 %v1710_v48  ;;  %935 = vmatprep.mubr.bf16.mxu0 %v1710_v48  ;;  %v542_v19 = vmax.f32 %v510_v15, 0.0  ;;  %v513_v20 = vadd.f32 %v1304_v18, %v2042_v49  ;;  %v504_v21 = vpop.f32.mrb[11].mxu0 }
 0x1a4   : > { %1319 = vmatpush1.bf16.msra.mxu1 %v2002_v30  ;;  %v540_v22 = vmax.f32 %v502_v17, 0.0  ;;  %v505_v23 = vadd.f32 %v2042_v49, %v504_v21 }
 0x1a5   : > { %v543_v24 = vmax.f32 %v513_v20, 0.0  ;;  %1312 = vmatprep.subr.bf16.mxu1 %v2005_v31 }
 0x1a6   : > { %v541_v25 = vmax.f32 %v505_v23, 0.0 }
 0x1a7   : > { %v553_v26 = vpack.c.bf16 %v543_v24, %v542_v19 }
 0x1a8   : > { %v552_v27 = vpack.c.bf16 %v541_v25, %v540_v22  ;;  %1320 = vmatpush1.bf16.msra.mxu1 %v2008_v32  ;;  %v1307_v28 = vpop.f32.mrb[12].mxu0 }
 0x1a9   : > { %1313 = vmatprep.subr.bf16.mxu1 %v2011_v33  ;;  %v526_v29 = vadd.f32 %v1307_v28, %v2042_v49  ;;  %v517_v34 = vpop.f32.mrb[13].mxu0 }
 0x1aa   : > { %823 = vmatmul.mubr.bf16.gmra.mrb[8].mxu1 %v550_v13  ;;  %936 = vmatmul.mubr.bf16.gmra.mrb[24].mxu0 %v550_v13  ;;  %v518_v30 = vadd.f32 %v2042_v49, %v517_v34  ;;  %v1308_v35 = vpop.f32.mrb[14].mxu0 }
 0x1ab   : > { %832 = vmatprep.mubr.bf16.mxu1 %v1710_v48  ;;  %945 = vmatprep.mubr.bf16.mxu0 %v1710_v48  ;;  %v546_v31 = vmax.f32 %v526_v29, 0.0  ;;  %v529_v39 = vadd.f32 %v1308_v35, %v2042_v49  ;;  %v520_v40 = vpop.f32.mrb[15].mxu0 }
 0x1ac   : > { %1321 = vmatpush1.bf16.msra.mxu1 %v2016_v36  ;;  %v544_v32 = vmax.f32 %v518_v30, 0.0  ;;  %v521_v33 = vadd.f32 %v2042_v49, %v520_v40  ;;  %v590_v36 = vlaneseq }
 0x1ad   : > { %v547_v42 = vmax.f32 %v529_v39, 0.0  ;;  %1314 = vmatprep.subr.bf16.mxu1 %v2019_v37 }
 0x1ae   : > { %v545_v44 = vmax.f32 %v521_v33, 0.0  ;;  %v591_v37 = vshrl.u32 %v590_v36, 7 }
 0x1af   : > { %v555_v46 = vpack.c.bf16 %v547_v42, %v546_v31 }
 0x1b0   : > { %v554_v50 = vpack.c.bf16 %v545_v44, %v544_v32  ;;  %1322 = vmatpush1.bf16.msra.mxu1 %v2022_v38  ;;  %v592_v38 = vsub.s32 0, %v591_v37 }
 0x1b1   : > { %1315 = vmatprep.subr.bf16.mxu1 %v2027_v41  ;;  %v600_v41 = vsub.s32 2, %v591_v37 }
 0x1b2   : > { %833 = vmatmul.mubr.bf16.gmra.mrb[12].mxu1 %v551_v12  ;;  %946 = vmatmul.mubr.bf16.gmra.mrb[28].mxu0 %v551_v12 }
 0x1b3   : > { %842 = vmatprep.mubr.bf16.mxu1 %v1710_v48  ;;  %955 = vmatprep.mubr.bf16.mxu0 %v1710_v48 }
 0x1b4   : > { %1323 = vmatpush1.bf16.msra.mxu1 %v2029_v43  ;;  %v588_v43 = vld [vmem:[#allocation10] sm:$0xf] }
 0x1b5   : > { %1316 = vmatprep.subr.bf16.mxu1 %v2033_v45  ;;  %v596_v45 = vsub.s32 1, %v591_v37  ;;  %v2090_v49 = vrot.slane %v588_v43, %v592_v38  ;;  %v2092_v51 = vrot.slane %v588_v43, %v600_v41 }
 0x1b7   : > { %v2094_v52 = vrot.slane %v588_v43, %v596_v45 }
 0x1b8   : > { %1324 = vmatpush1.bf16.msra.mxu1 %v2035_v47  ;;  %v604_v47 = vsub.s32 3, %v591_v37 }
 0x1ba   : > { %843 = vmatmul.mubr.bf16.gmra.mrb[16].mxu1 %v552_v27  ;;  %956 = vmatmul.mubr.bf16.gmra.mrb[32].mxu0 %v552_v27  ;;  %v2096_v53 = vrot.slane %v588_v43, %v604_v47 }
 0x1bb   : > { %852 = vmatprep.mubr.bf16.mxu1 %v1710_v48  ;;  %965 = vmatprep.mubr.bf16.mxu0 %v1710_v48 }
 0x1c2   : > { %853 = vmatmul.mubr.bf16.gmra.mrb[20].mxu1 %v553_v26  ;;  %966 = vmatmul.mubr.bf16.gmra.mrb[36].mxu0 %v553_v26 }
 0x1c3   : > { %862 = vmatprep.mubr.bf16.mxu1 %v1710_v48 }
 0x1ca   : > { %863 = vmatmul.mubr.bf16.gmra.mrb[24].mxu1 %v554_v50 }
 0x1cb   : > { %872 = vmatprep.mubr.bf16.mxu1 %v1710_v48 }
 0x1d2   : > { %873 = vmatmul.mubr.bf16.gmra.mrb[28].mxu1 %v555_v46 }
 0x1d3   : > { %975 = vmatprep.mubr.bf16.mxu1 %v1710_v48 }
 0x1da   : > { %976 = vmatmul.mubr.bf16.vlgmr.msra.gmra.mrb[32].mxu1 %v554_v50 }
 0x1db   : > { %985 = vmatprep.mubr.bf16.mxu1 %v1710_v48 }
 0x1e2   : > { %986 = vmatmul.mubr.bf16.gmra.mrb[36].mxu1 %v555_v46 }
 0x26d   : > { %v804_v54 = vpop.f32.mrb[0].mxu1  ;;  %v917_v55 = vpop.f32.mrb[16].mxu0 }
 0x26e   : > { %v805_v48 = vadd.f32 %v804_v54, %v2090_v49  ;;  %v918_v56 = vadd.f32 %v917_v55, %v2092_v51  ;;  %v806_v57 = vpop.f32.mrb[1].mxu1  ;;  %v919_v58 = vpop.f32.mrb[17].mxu0 }
 0x26f   : > { %v807_v59 = vadd.f32 %v806_v57, %v2094_v52  ;;  %v920_v60 = vadd.f32 %v919_v58, %v2096_v53  ;;  %v808_v61 = vpop.f32.mrb[2].mxu1  ;;  %v921_v62 = vpop.f32.mrb[18].mxu0 }
 0x270   : > { %996 = vst [vmem:[%s2102_s26] sm:$0xff] %v805_v48  ;;  %998 = vst [vmem:[%s2102_s26 + $0x10] sm:$0xff] %v918_v56  ;;  %v809_v63 = vadd.f32 %v808_v61, %v2090_v49  ;;  %v922_v0 = vadd.f32 %v921_v62, %v2092_v51  ;;  %v810_v1 = vpop.f32.mrb[3].mxu1  ;;  %v923_v2 = vpop.f32.mrb[19].mxu0 }
 0x271   : > { %997 = vst [vmem:[%s2102_s26 + $0x8] sm:$0xff] %v807_v59  ;;  %999 = vst [vmem:[%s2102_s26 + $0x18] sm:$0xff] %v920_v60  ;;  %v811_v3 = vadd.f32 %v810_v1, %v2094_v52  ;;  %v924_v4 = vadd.f32 %v923_v2, %v2096_v53 }
 0x272   : > { %1000 = vst [vmem:[%s2102_s26 + $0x20] sm:$0xff] %v809_v63  ;;  %1002 = vst [vmem:[%s2102_s26 + $0x30] sm:$0xff] %v922_v0 }
 0x273   : > { %1001 = vst [vmem:[%s2102_s26 + $0x28] sm:$0xff] %v811_v3  ;;  %1003 = vst [vmem:[%s2102_s26 + $0x38] sm:$0xff] %v924_v4 }
 0x275   : > { %v814_v5 = vpop.f32.mrb[4].mxu1  ;;  %v927_v6 = vpop.f32.mrb[20].mxu0 }
 0x276   : > { %v815_v7 = vadd.f32 %v814_v5, %v2090_v49  ;;  %v928_v8 = vadd.f32 %v927_v6, %v2092_v51  ;;  %v816_v9 = vpop.f32.mrb[5].mxu1  ;;  %v929_v10 = vpop.f32.mrb[21].mxu0 }
 0x277   : > { %v817_v11 = vadd.f32 %v816_v9, %v2094_v52  ;;  %v930_v12 = vadd.f32 %v929_v10, %v2096_v53  ;;  %v818_v13 = vpop.f32.mrb[6].mxu1  ;;  %v931_v14 = vpop.f32.mrb[22].mxu0 }
 0x278   : > { %1004 = vst [vmem:[%s2102_s26 + $0x40] sm:$0xff] %v815_v7  ;;  %1006 = vst [vmem:[%s2102_s26 + $0x50] sm:$0xff] %v928_v8  ;;  %v819_v15 = vadd.f32 %v818_v13, %v2090_v49  ;;  %v932_v16 = vadd.f32 %v931_v14, %v2092_v51  ;;  %v820_v17 = vpop.f32.mrb[7].mxu1  ;;  %v933_v18 = vpop.f32.mrb[23].mxu0 }
 0x279   : > { %1005 = vst [vmem:[%s2102_s26 + $0x48] sm:$0xff] %v817_v11  ;;  %1007 = vst [vmem:[%s2102_s26 + $0x58] sm:$0xff] %v930_v12  ;;  %v821_v19 = vadd.f32 %v820_v17, %v2094_v52  ;;  %v934_v20 = vadd.f32 %v933_v18, %v2096_v53 }
 0x27a   : > { %1008 = vst [vmem:[%s2102_s26 + $0x60] sm:$0xff] %v819_v15  ;;  %1010 = vst [vmem:[%s2102_s26 + $0x70] sm:$0xff] %v932_v16 }
 0x27b   : > { %1009 = vst [vmem:[%s2102_s26 + $0x68] sm:$0xff] %v821_v19  ;;  %1011 = vst [vmem:[%s2102_s26 + $0x78] sm:$0xff] %v934_v20 }
 0x27d   : > { %v824_v21 = vpop.f32.mrb[8].mxu1  ;;  %v937_v22 = vpop.f32.mrb[24].mxu0 }
 0x27e   : > { %v825_v23 = vadd.f32 %v824_v21, %v2090_v49  ;;  %v938_v24 = vadd.f32 %v937_v22, %v2092_v51  ;;  %v826_v25 = vpop.f32.mrb[9].mxu1  ;;  %v939_v26 = vpop.f32.mrb[25].mxu0 }
 0x27f   : > { %v827_v27 = vadd.f32 %v826_v25, %v2094_v52  ;;  %v940_v28 = vadd.f32 %v939_v26, %v2096_v53  ;;  %v828_v29 = vpop.f32.mrb[10].mxu1  ;;  %v941_v34 = vpop.f32.mrb[26].mxu0 }
 0x280   : > { %1012 = vst [vmem:[%s2102_s26 + $0x80] sm:$0xff] %v825_v23  ;;  %1014 = vst [vmem:[%s2102_s26 + $0x90] sm:$0xff] %v938_v24  ;;  %v829_v30 = vadd.f32 %v828_v29, %v2090_v49  ;;  %v942_v35 = vadd.f32 %v941_v34, %v2092_v51  ;;  %v830_v31 = vpop.f32.mrb[11].mxu1  ;;  %v943_v39 = vpop.f32.mrb[27].mxu0 }
 0x281   : > { %1013 = vst [vmem:[%s2102_s26 + $0x88] sm:$0xff] %v827_v27  ;;  %1015 = vst [vmem:[%s2102_s26 + $0x98] sm:$0xff] %v940_v28  ;;  %v831_v40 = vadd.f32 %v830_v31, %v2094_v52  ;;  %v944_v32 = vadd.f32 %v943_v39, %v2096_v53 }
 0x282   : > { %1016 = vst [vmem:[%s2102_s26 + $0xa0] sm:$0xff] %v829_v30  ;;  %1018 = vst [vmem:[%s2102_s26 + $0xb0] sm:$0xff] %v942_v35 }
 0x283   : > { %1017 = vst [vmem:[%s2102_s26 + $0xa8] sm:$0xff] %v831_v40  ;;  %1019 = vst [vmem:[%s2102_s26 + $0xb8] sm:$0xff] %v944_v32 }
 0x285   : > { %v834_v33 = vpop.f32.mrb[12].mxu1  ;;  %v947_v42 = vpop.f32.mrb[28].mxu0 }
 0x286   : > { %v835_v44 = vadd.f32 %v834_v33, %v2090_v49  ;;  %v948_v46 = vadd.f32 %v947_v42, %v2092_v51  ;;  %v836_v50 = vpop.f32.mrb[13].mxu1  ;;  %v949_v36 = vpop.f32.mrb[29].mxu0 }
 0x287   : > { %v837_v37 = vadd.f32 %v836_v50, %v2094_v52  ;;  %v950_v38 = vadd.f32 %v949_v36, %v2096_v53  ;;  %v838_v41 = vpop.f32.mrb[14].mxu1  ;;  %v951_v43 = vpop.f32.mrb[30].mxu0 }
 0x288   : > { %1020 = vst [vmem:[%s2102_s26 + $0xc0] sm:$0xff] %v835_v44  ;;  %1022 = vst [vmem:[%s2102_s26 + $0xd0] sm:$0xff] %v948_v46  ;;  %v839_v45 = vadd.f32 %v838_v41, %v2090_v49  ;;  %v952_v47 = vadd.f32 %v951_v43, %v2092_v51  ;;  %v840_v54 = vpop.f32.mrb[15].mxu1  ;;  %v953_v55 = vpop.f32.mrb[31].mxu0 }
 0x289   : > { %1021 = vst [vmem:[%s2102_s26 + $0xc8] sm:$0xff] %v837_v37  ;;  %1023 = vst [vmem:[%s2102_s26 + $0xd8] sm:$0xff] %v950_v38  ;;  %v841_v48 = vadd.f32 %v840_v54, %v2094_v52  ;;  %v954_v56 = vadd.f32 %v953_v55, %v2096_v53 }
 0x28a   : > { %1024 = vst [vmem:[%s2102_s26 + $0xe0] sm:$0xff] %v839_v45  ;;  %1026 = vst [vmem:[%s2102_s26 + $0xf0] sm:$0xff] %v952_v47 }
 0x28b   : > { %1025 = vst [vmem:[%s2102_s26 + $0xe8] sm:$0xff] %v841_v48  ;;  %1027 = vst [vmem:[%s2102_s26 + $0xf8] sm:$0xff] %v954_v56 }
 0x28d   : > { %v844_v57 = vpop.f32.mrb[16].mxu1  ;;  %v957_v58 = vpop.f32.mrb[32].mxu0 }
 0x28e   : > { %v845_v59 = vadd.f32 %v844_v57, %v2090_v49  ;;  %v958_v60 = vadd.f32 %v957_v58, %v2092_v51  ;;  %v846_v61 = vpop.f32.mrb[17].mxu1  ;;  %v959_v62 = vpop.f32.mrb[33].mxu0 }
 0x28f   : > { %v847_v63 = vadd.f32 %v846_v61, %v2094_v52  ;;  %v960_v0 = vadd.f32 %v959_v62, %v2096_v53  ;;  %v848_v1 = vpop.f32.mrb[18].mxu1  ;;  %v961_v2 = vpop.f32.mrb[34].mxu0 }
 0x290   : > { %1028 = vst [vmem:[%s2102_s26 + $0x100] sm:$0xff] %v845_v59  ;;  %1030 = vst [vmem:[%s2102_s26 + $0x110] sm:$0xff] %v958_v60  ;;  %v849_v3 = vadd.f32 %v848_v1, %v2090_v49  ;;  %v962_v4 = vadd.f32 %v961_v2, %v2092_v51  ;;  %v850_v5 = vpop.f32.mrb[19].mxu1  ;;  %v963_v6 = vpop.f32.mrb[35].mxu0 }
 0x291   : > { %1029 = vst [vmem:[%s2102_s26 + $0x108] sm:$0xff] %v847_v63  ;;  %1031 = vst [vmem:[%s2102_s26 + $0x118] sm:$0xff] %v960_v0  ;;  %v851_v7 = vadd.f32 %v850_v5, %v2094_v52  ;;  %v964_v8 = vadd.f32 %v963_v6, %v2096_v53 }
 0x292   : > { %1032 = vst [vmem:[%s2102_s26 + $0x120] sm:$0xff] %v849_v3  ;;  %1034 = vst [vmem:[%s2102_s26 + $0x130] sm:$0xff] %v962_v4 }
 0x293   : > { %1033 = vst [vmem:[%s2102_s26 + $0x128] sm:$0xff] %v851_v7  ;;  %1035 = vst [vmem:[%s2102_s26 + $0x138] sm:$0xff] %v964_v8 }
 0x295   : > { %v854_v9 = vpop.f32.mrb[20].mxu1  ;;  %v967_v10 = vpop.f32.mrb[36].mxu0 }
 0x296   : > { %v855_v11 = vadd.f32 %v854_v9, %v2090_v49  ;;  %v968_v12 = vadd.f32 %v967_v10, %v2092_v51  ;;  %v856_v13 = vpop.f32.mrb[21].mxu1  ;;  %v969_v14 = vpop.f32.mrb[37].mxu0 }
 0x297   : > { %v857_v15 = vadd.f32 %v856_v13, %v2094_v52  ;;  %v970_v16 = vadd.f32 %v969_v14, %v2096_v53  ;;  %v858_v17 = vpop.f32.mrb[22].mxu1  ;;  %v971_v18 = vpop.f32.mrb[38].mxu0 }
 0x298   : > { %1036 = vst [vmem:[%s2102_s26 + $0x140] sm:$0xff] %v855_v11  ;;  %1038 = vst [vmem:[%s2102_s26 + $0x150] sm:$0xff] %v968_v12  ;;  %v859_v19 = vadd.f32 %v858_v17, %v2090_v49  ;;  %v972_v20 = vadd.f32 %v971_v18, %v2092_v51  ;;  %v860_v21 = vpop.f32.mrb[23].mxu1  ;;  %v973_v22 = vpop.f32.mrb[39].mxu0 }
 0x299   : > { %1037 = vst [vmem:[%s2102_s26 + $0x148] sm:$0xff] %v857_v15  ;;  %1039 = vst [vmem:[%s2102_s26 + $0x158] sm:$0xff] %v970_v16  ;;  %v861_v23 = vadd.f32 %v860_v21, %v2094_v52  ;;  %v974_v24 = vadd.f32 %v973_v22, %v2096_v53 }
 0x29a   : > { %1040 = vst [vmem:[%s2102_s26 + $0x160] sm:$0xff] %v859_v19  ;;  %1042 = vst [vmem:[%s2102_s26 + $0x170] sm:$0xff] %v972_v20 }
 0x29b   : > { %1041 = vst [vmem:[%s2102_s26 + $0x168] sm:$0xff] %v861_v23  ;;  %1043 = vst [vmem:[%s2102_s26 + $0x178] sm:$0xff] %v974_v24 }
 0x29d   : > { %v864_v25 = vpop.f32.mrb[24].mxu1 }
 0x29e   : > { %v865_v26 = vadd.f32 %v864_v25, %v2090_v49  ;;  %v866_v27 = vpop.f32.mrb[25].mxu1 }
 0x29f   : > { %v867_v28 = vadd.f32 %v866_v27, %v2094_v52  ;;  %v868_v29 = vpop.f32.mrb[26].mxu1 }
 0x2a0   : > { %1044 = vst [vmem:[%s2102_s26 + $0x180] sm:$0xff] %v865_v26  ;;  %v869_v34 = vadd.f32 %v868_v29, %v2090_v49  ;;  %v870_v30 = vpop.f32.mrb[27].mxu1 }
 0x2a1   : > { %1045 = vst [vmem:[%s2102_s26 + $0x188] sm:$0xff] %v867_v28  ;;  %v871_v35 = vadd.f32 %v870_v30, %v2094_v52 }
 0x2a2   : > { %1048 = vst [vmem:[%s2102_s26 + $0x1a0] sm:$0xff] %v869_v34 }
 0x2a3   : > { %1049 = vst [vmem:[%s2102_s26 + $0x1a8] sm:$0xff] %v871_v35 }
 0x2a5   : > { %v874_v31 = vpop.f32.mrb[28].mxu1 }
 0x2a6   : > { %v875_v39 = vadd.f32 %v874_v31, %v2090_v49  ;;  %v876_v40 = vpop.f32.mrb[29].mxu1 }
 0x2a7   : > { %v877_v32 = vadd.f32 %v876_v40, %v2094_v52  ;;  %v878_v33 = vpop.f32.mrb[30].mxu1 }
 0x2a8   : > { %1052 = vst [vmem:[%s2102_s26 + $0x1c0] sm:$0xff] %v875_v39  ;;  %v879_v42 = vadd.f32 %v878_v33, %v2090_v49  ;;  %v880_v44 = vpop.f32.mrb[31].mxu1 }
 0x2a9   : > { %1053 = vst [vmem:[%s2102_s26 + $0x1c8] sm:$0xff] %v877_v32  ;;  %v881_v46 = vadd.f32 %v880_v44, %v2094_v52 }
 0x2aa   : > { %1056 = vst [vmem:[%s2102_s26 + $0x1e0] sm:$0xff] %v879_v42 }
 0x2ab   : > { %1057 = vst [vmem:[%s2102_s26 + $0x1e8] sm:$0xff] %v881_v46 }
 0x2ad   : > { %v977_v50 = vpop.f32.mrb[32].mxu1 }
 0x2ae   : > { %v978_v36 = vadd.f32 %v977_v50, %v2092_v51  ;;  %v979_v37 = vpop.f32.mrb[33].mxu1 }
 0x2af   : > { %v980_v38 = vadd.f32 %v979_v37, %v2096_v53  ;;  %v981_v41 = vpop.f32.mrb[34].mxu1 }
 0x2b0   : > { %1046 = vst [vmem:[%s2102_s26 + $0x190] sm:$0xff] %v978_v36  ;;  %v982_v49 = vadd.f32 %v981_v41, %v2092_v51  ;;  %v983_v43 = vpop.f32.mrb[35].mxu1 }
 0x2b1   : > { %1047 = vst [vmem:[%s2102_s26 + $0x198] sm:$0xff] %v980_v38  ;;  %v984_v52 = vadd.f32 %v983_v43, %v2096_v53 }
 0x2b2   : > { %1050 = vst [vmem:[%s2102_s26 + $0x1b0] sm:$0xff] %v982_v49 }
 0x2b3   : > { %1051 = vst [vmem:[%s2102_s26 + $0x1b8] sm:$0xff] %v984_v52 }
 0x2b5   : > { %v987_v45 = vpop.f32.mrb[36].mxu1 }
 0x2b6   : > { %v988_v47 = vadd.f32 %v987_v45, %v2092_v51  ;;  %v989_v54 = vpop.f32.mrb[37].mxu1 }
 0x2b7   : > { %v990_v55 = vadd.f32 %v989_v54, %v2096_v53  ;;  %v991_v48 = vpop.f32.mrb[38].mxu1 }
 0x2b8   : > { %1054 = vst [vmem:[%s2102_s26 + $0x1d0] sm:$0xff] %v988_v47  ;;  %v992_v56 = vadd.f32 %v991_v48, %v2092_v51  ;;  %v993_v57 = vpop.f32.mrb[39].mxu1 }
 0x2b9   : > { %1055 = vst [vmem:[%s2102_s26 + $0x1d8] sm:$0xff] %v990_v55  ;;  %v994_v58 = vadd.f32 %v993_v57, %v2096_v53 }
 0x2ba   : > { %1058 = vst [vmem:[%s2102_s26 + $0x1f0] sm:$0xff] %v992_v56 }
 0x2bb   : > { %1059 = vst [vmem:[%s2102_s26 + $0x1f8] sm:$0xff] %v994_v58 }
 0x2bc   : > { %1638 = shalt.err (!%p1635_p13)
}
 0x2bd   : > { %s1639_s14 = scalar_lea.hbm %s2229_s6, 8192  ;;  %s1643_s10 = scalar_lea.hbm %s2284_s5, 16384 }
 0x2be   : > { %p1640_p9 = scmp.ne.s32.totalorder %s2229_s6, %s1639_s14  ;;  %p1644_p6 = scmp.lt.u32.totalorder %s2229_s6, %s2284_s5 }
 0x2bf   : > { %p1645_p10 = scmp.lt.u32.totalorder %s1643_s10, %s1639_s14  ;;  %p1647_p4 = scmp.lt.u32.totalorder %s1639_s14, %s2229_s6 }
 0x2c0   : > { %p1641_p0 = pnand %p1640_p9, %p1913_p8 }
 0x2c1   : > { %p1646_p3 = por %p1645_p10, %p1644_p6 }
 0x2c2   : > { %p1642_p11 = pneg %p1641_p0 }
 0x2c3   : > { %p1648_p5 = por %p1647_p4, %p1646_p3 }
 0x2c5   : > { %p1649_p7 = pnand %p1648_p5, %p1642_p11 }
 0x2c7   : > { %1652 = shalt.err (!%p1649_p7)
}
 0x2c8   : > { %s1712_s17 = smov 512   ;;  %s1713_s23 = smov 32  }
 0x2c9   : > { %1343 = dma.vmem_to_hbm [thread:$0]  (%p1913_p8), %s2231_s13, 8192, %s2229_s6, %s1061_s22, %s1712_s17, %s1712_s17, %s1713_s23  }
 0x2ca PF: > { %s1090_s7 = sand.u32 1, %s1687_s18   ;;  %p2304_p12 = scmp.ne.s32.totalorder %s2290_s25, 0 }
 0x2cb   : > { %p2305_p1 = scmp.ge.s32.totalorder %s1699_s21, 2  ;;  %s1091_s30 = scalar_lea.sflag [#allocation4], %s1090_s7 }
 0x2cd   : > { %p1363_p2 = pnand %p2305_p1, %p2304_p12 }
 0x2cf   : > { %1682 = dma.done.wait (!%p1363_p2), %s1091_s30, 8192  }
 0x2d0   : > { %1684 = vsyncadd (!%p1363_p2), %s1091_s30, 4294959104  ;;  %p20_p13 = scmp.ge.s32.totalorder %s1900_s12, 4   ;;  %s2306_s18 = smov %s1691_s19 }
 0x2d1   : > { %s2307_s19 = smov %s1695_s20  ;;  %s2308_s20 = smov %s1909_s16 }
 0x2d2   : > { %s2309_s21 = smov %s1900_s12  ;;  %22 = sbr.rel (!%p20_p13) target bundleno = 7 (0x7), region = 101 }
 0x2d9   :  { %1096 = vsyncpa [#allocation3], 1 }
 0x2da   :  { %1098 = vsyncpa [#allocation3 + $0x1], 1 }
 0x2db   :  { %1099 = vsyncpa [#allocation6], 1 }
 0x2dc   :  { %1100 = vsyncpa [#allocation9], 1 }
 0x2dd   :  { %1101 = vsyncpa [#allocation4], 1 }
 0x2de   :  { %1103 = vsyncpa [#allocation4 + $0x1], 1 }

</bundles_post_ra>
